<compile_context>
chip_gen: v6e
topology: v6e:2x2x1
jax: 0.10.0
libtpu: 0.0.40
codegen_flags: <defaults>
</compile_context>

<pallas_src>
import jax
import jax.numpy as jnp
from jax.experimental import pallas as pl
from jax.experimental.pallas import tpu as pltpu


def _round_up(x, m):
    return ((x + m - 1) // m) * m


def _emotion_kernel(x_ref, w1_ref, b1_ref, w2_ref, b2_ref,
                    fw1_ref, fb1_ref, fw2_ref, fb2_ref, out_ref):
    f32 = jnp.float32
    bf16 = jnp.bfloat16

    # Layer 1 (block-diag audio|text): (tb, in_pad) @ (in_pad, 384)
    x = x_ref[...].astype(bf16)
    h = jnp.dot(x, w1_ref[...], preferred_element_type=f32) + b1_ref[...]
    h = jnp.maximum(h, 0.0)
    # TODO(synk): Dropout(0.3) layers are identity here (eval semantics).

    # Layer 2 (block-diag): (tb, 384) @ (384, 128) -> [a_enc | t_enc] (= concat)
    h = jnp.dot(h.astype(bf16), w2_ref[...], preferred_element_type=f32) + b2_ref[...]
    h = jnp.maximum(h, 0.0)

    # Fusion layer 1: (tb, 128) @ (128, 128)  (64 real cols, 64 zero-pad cols)
    h = jnp.dot(h.astype(bf16), fw1_ref[...], preferred_element_type=f32) + fb1_ref[...]
    h = jnp.maximum(h, 0.0)

    # Fusion layer 2: (tb, 128) @ (128, out_cols) -- lane-dense padded head.
    logits = jnp.dot(h.astype(bf16), fw2_ref[...], preferred_element_type=f32) + fb2_ref[...]
    out_ref[...] = logits.astype(out_ref.dtype)


def pack_params(p, num_emotions):
    """Build block-diagonal, lane/sublane-aligned bf16 weights (one-time, host)."""
    audio_dim = p["aw1"].shape[0]
    text_dim = p["tw1"].shape[0]
    in_dim = audio_dim + text_dim
    in_pad = _round_up(in_dim, 128)

    # Block-diag layer 1: (in_pad, 128 + 256). Extra zero rows match zero-padded
    # input columns, so they contribute nothing.
    w1 = jnp.zeros((in_pad, 128 + 256), jnp.float32)
    w1 = w1.at[:audio_dim, :128].set(p["aw1"])
    w1 = w1.at[audio_dim:in_dim, 128:].set(p["tw1"])
    b1 = jnp.concatenate([p["ab1"], p["tb1"]], axis=1)

    # Block-diag layer 2: (384, 64 + 64); output columns are [a_enc | t_enc].
    w2 = jnp.zeros((128 + 256, 64 + 64), jnp.float32)
    w2 = w2.at[:128, :64].set(p["aw2"])
    w2 = w2.at[128:, 64:].set(p["tw2"])
    b2 = jnp.concatenate([p["ab2"], p["tb2"]], axis=1)

    # Fusion layer 1 padded 64 -> 128 output cols (zero weights + zero bias, so
    # the pad activations are exactly 0 after ReLU).
    fw1 = jnp.zeros((128, 128), jnp.float32).at[:, :64].set(p["fw1"])
    fb1 = jnp.zeros((1, 128), jnp.float32).at[:, :64].set(p["fb1"])

    # Lane-dense padded output head; pad rows 64 -> 128 (zero rows hit the zero
    # pad activations of fusion layer 1 -> no effect).
    out_cols = _round_up(max(num_emotions, 1), 128)
    fw2 = jnp.zeros((128, out_cols), jnp.float32).at[:64, :num_emotions].set(p["fw2"])
    fb2 = jnp.zeros((1, out_cols), jnp.float32).at[:, :num_emotions].set(p["fb2"])

    return {
        "w1": w1.astype(jnp.bfloat16), "b1": b1,
        "w2": w2.astype(jnp.bfloat16), "b2": b2,
        "fw1": fw1.astype(jnp.bfloat16), "fb1": fb1,
        "fw2": fw2.astype(jnp.bfloat16), "fb2": fb2,
        "num_emotions": num_emotions,
        "out_cols": out_cols,
        "in_pad": in_pad,
    }


def emotion_classifier_forward(audio_features, text_features, packed, *, tile_b=512):
    """audio_features: (B, audio_dim), text_features: (B, text_dim).

    Returns (B, num_emotions) f32 logits.
    """
    B = audio_features.shape[0]
    num_emotions = packed["num_emotions"]
    out_cols = packed["out_cols"]
    in_pad = packed["in_pad"]

    # Concat once on the host: (B, audio_dim + text_dim) feeds the block-diag W1,
    # then zero-pad the feature dim to the lane-aligned width.
    x = jnp.concatenate(
        [audio_features.astype(jnp.float32), text_features.astype(jnp.float32)],
        axis=1)
    if x.shape[1] != in_pad:
        x = jnp.pad(x, ((0, 0), (0, in_pad - x.shape[1])))

    # Batch tile: at least one sublane tile (8 rows), at most tile_b; pad B.
    tb = max(8, min(tile_b, _round_up(B, 8)))
    B_pad = _round_up(B, tb)
    if B_pad != B:
        x = jnp.pad(x, ((0, B_pad - B), (0, 0)))

    grid = (B_pad // tb,)
    row_map = lambda i: (i, 0)     # activation/output tiles walk the batch
    fixed_map = lambda i: (0, 0)   # weights/biases stay resident

    weights = (packed["w1"], packed["b1"], packed["w2"], packed["b2"],
               packed["fw1"], packed["fb1"], packed["fw2"], packed["fb2"])

    out = pl.pallas_call(
        _emotion_kernel,
        out_shape=jax.ShapeDtypeStruct((B_pad, out_cols), jnp.float32),
        grid=grid,
        in_specs=[pl.BlockSpec((tb, in_pad), row_map)]
                 + [pl.BlockSpec(w.shape, fixed_map) for w in weights],
        out_specs=pl.BlockSpec((tb, out_cols), row_map),
        compiler_params=pltpu.CompilerParams(
            dimension_semantics=("parallel",)),
    )(x, *weights)

    return out[:B, :num_emotions]


def init_params(key, audio_dim, text_dim, num_emotions):
    """Deterministic synthetic parameters. Weights are (in_dim, out_dim), f32."""
    keys = jax.random.split(key, 6)
    scale = 0.05

    def w(k, i, o):
        return (scale * jax.random.normal(k, (i, o))).astype(jnp.float32)

    def b(o):
        return jnp.zeros((1, o), jnp.float32) + 0.01

    return {
        "aw1": w(keys[0], audio_dim, 128), "ab1": b(128),
        "aw2": w(keys[1], 128, 64),        "ab2": b(64),
        "tw1": w(keys[2], text_dim, 256),  "tb1": b(256),
        "tw2": w(keys[3], 256, 64),        "tb2": b(64),
        "fw1": w(keys[4], 128, 64),        "fb1": b(64),
        "fw2": w(keys[5], 64, num_emotions), "fb2": b(num_emotions),
    }


def reference_forward(audio, text, p):
    """Pure-JAX f32 reference matching the PyTorch module (eval mode)."""
    relu = lambda v: jnp.maximum(v, 0.0)
    a = relu(audio @ p["aw1"] + p["ab1"])
    a = relu(a @ p["aw2"] + p["ab2"])
    t = relu(text @ p["tw1"] + p["tb1"])
    t = relu(t @ p["tw2"] + p["tb2"])
    c = jnp.concatenate([a, t], axis=1)
    f = relu(c @ p["fw1"] + p["fb1"])
    return f @ p["fw2"] + p["fb2"]


if __name__ == "__main__":
    B = 4
    audio_dim = 40
    text_dim = 96
    num_emotions = 7

    key = jax.random.PRNGKey(0)
    k_a, k_t, k_p = jax.random.split(key, 3)

    audio_features = jax.random.normal(k_a, (B, audio_dim), jnp.float32)
    text_features = jax.random.normal(k_t, (B, text_dim), jnp.float32)
    params = init_params(k_p, audio_dim, text_dim, num_emotions)
    packed = pack_params(params, num_emotions)

    logits = emotion_classifier_forward(audio_features, text_features, packed)
    logits = jax.block_until_ready(logits)

    ref = reference_forward(audio_features, text_features, params)
    assert logits.shape == (B, num_emotions)
    # Kernel uses bf16 weights/activations with f32 accumulation -> relaxed tol.
    assert jnp.allclose(logits, ref, atol=2e-2, rtol=2e-2)

    print("KERNEL_OK")
</pallas_src>

<mosaic_0001>
module attributes {stable_mosaic.version = 11 : i64} {
  func.func @_emotion_kernel(%arg0: i32, %arg1: memref<8x256xf32, #tpu.memory_space<vmem>>, %arg2: memref<256x384xbf16, #tpu.memory_space<vmem>>, %arg3: memref<1x384xf32, #tpu.memory_space<vmem>>, %arg4: memref<384x128xbf16, #tpu.memory_space<vmem>>, %arg5: memref<1x128xf32, #tpu.memory_space<vmem>>, %arg6: memref<128x128xbf16, #tpu.memory_space<vmem>>, %arg7: memref<1x128xf32, #tpu.memory_space<vmem>>, %arg8: memref<128x128xbf16, #tpu.memory_space<vmem>>, %arg9: memref<1x128xf32, #tpu.memory_space<vmem>>, %arg10: memref<8x128xf32, #tpu.memory_space<vmem>>) attributes {dimension_semantics = [#tpu.dimension_semantics<parallel>], iteration_bounds = array<i64: 1>, scalar_prefetch = 0 : i64, scratch_operands = 0 : i64, tpu.core_type = #tpu.core_type<tc>, window_params = [{transform_indices = @transform_0, window_bounds = array<i64: 8, 256>}, {pipeline_mode = #tpu.pipeline_mode<synchronous>, transform_indices = @transform_1, window_bounds = array<i64: 256, 384>}, {pipeline_mode = #tpu.pipeline_mode<synchronous>, transform_indices = @transform_2, window_bounds = array<i64: 1, 384>}, {pipeline_mode = #tpu.pipeline_mode<synchronous>, transform_indices = @transform_3, window_bounds = array<i64: 384, 128>}, {pipeline_mode = #tpu.pipeline_mode<synchronous>, transform_indices = @transform_4, window_bounds = array<i64: 1, 128>}, {pipeline_mode = #tpu.pipeline_mode<synchronous>, transform_indices = @transform_5, window_bounds = array<i64: 128, 128>}, {pipeline_mode = #tpu.pipeline_mode<synchronous>, transform_indices = @transform_6, window_bounds = array<i64: 1, 128>}, {pipeline_mode = #tpu.pipeline_mode<synchronous>, transform_indices = @transform_7, window_bounds = array<i64: 128, 128>}, {pipeline_mode = #tpu.pipeline_mode<synchronous>, transform_indices = @transform_8, window_bounds = array<i64: 1, 128>}, {transform_indices = @transform_9, window_bounds = array<i64: 8, 128>}]} {
    %c0 = arith.constant 0 : index
    %c0_0 = arith.constant 0 : index
    %0 = vector.load %arg1[%c0, %c0_0] : memref<8x256xf32, #tpu.memory_space<vmem>>, vector<8x256xf32>
    %1 = arith.truncf %0 : vector<8x256xf32> to vector<8x256xbf16>
    %c0_1 = arith.constant 0 : index
    %c0_2 = arith.constant 0 : index
    %2 = vector.load %arg2[%c0_1, %c0_2] : memref<256x384xbf16, #tpu.memory_space<vmem>>, vector<256x384xbf16>
    %cst = arith.constant dense<0.000000e+00> : vector<8x384xf32>
    %3 = tpu.matmul %1, %2, %cst {dimension_numbers = #tpu.dot_dimension_numbers<[1], [0], [0], [1], [0, 0, 1, 1], [], []>} : vector<8x256xbf16>, vector<256x384xbf16>, vector<8x384xf32> -> vector<8x384xf32>
    %c0_3 = arith.constant 0 : index
    %c0_4 = arith.constant 0 : index
    %4 = vector.load %arg3[%c0_3, %c0_4] : memref<1x384xf32, #tpu.memory_space<vmem>>, vector<1x384xf32>
    %5 = vector.broadcast %4 : vector<1x384xf32> to vector<8x384xf32>
    %6 = arith.addf %3, %5 : vector<8x384xf32>
    %cst_5 = arith.constant 0.000000e+00 : f32
    %7 = vector.broadcast %cst_5 : f32 to vector<8x384xf32>
    %8 = arith.maximumf %6, %7 : vector<8x384xf32>
    %9 = arith.truncf %8 : vector<8x384xf32> to vector<8x384xbf16>
    %c0_6 = arith.constant 0 : index
    %c0_7 = arith.constant 0 : index
    %10 = vector.load %arg4[%c0_6, %c0_7] : memref<384x128xbf16, #tpu.memory_space<vmem>>, vector<384x128xbf16>
    %cst_8 = arith.constant dense<0.000000e+00> : vector<8x128xf32>
    %11 = tpu.matmul %9, %10, %cst_8 {dimension_numbers = #tpu.dot_dimension_numbers<[1], [0], [0], [1], [0, 0, 1, 1], [], []>} : vector<8x384xbf16>, vector<384x128xbf16>, vector<8x128xf32> -> vector<8x128xf32>
    %c0_9 = arith.constant 0 : index
    %c0_10 = arith.constant 0 : index
    %12 = vector.load %arg5[%c0_9, %c0_10] : memref<1x128xf32, #tpu.memory_space<vmem>>, vector<1x128xf32>
    %13 = vector.broadcast %12 : vector<1x128xf32> to vector<8x128xf32>
    %14 = arith.addf %11, %13 : vector<8x128xf32>
    %cst_11 = arith.constant 0.000000e+00 : f32
    %15 = vector.broadcast %cst_11 : f32 to vector<8x128xf32>
    %16 = arith.maximumf %14, %15 : vector<8x128xf32>
    %17 = arith.truncf %16 : vector<8x128xf32> to vector<8x128xbf16>
    %c0_12 = arith.constant 0 : index
    %c0_13 = arith.constant 0 : index
    %18 = vector.load %arg6[%c0_12, %c0_13] : memref<128x128xbf16, #tpu.memory_space<vmem>>, vector<128x128xbf16>
    %cst_14 = arith.constant dense<0.000000e+00> : vector<8x128xf32>
    %19 = tpu.matmul %17, %18, %cst_14 {dimension_numbers = #tpu.dot_dimension_numbers<[1], [0], [0], [1], [0, 0, 1, 1], [], []>} : vector<8x128xbf16>, vector<128x128xbf16>, vector<8x128xf32> -> vector<8x128xf32>
    %c0_15 = arith.constant 0 : index
    %c0_16 = arith.constant 0 : index
    %20 = vector.load %arg7[%c0_15, %c0_16] : memref<1x128xf32, #tpu.memory_space<vmem>>, vector<1x128xf32>
    %21 = vector.broadcast %20 : vector<1x128xf32> to vector<8x128xf32>
    %22 = arith.addf %19, %21 : vector<8x128xf32>
    %cst_17 = arith.constant 0.000000e+00 : f32
    %23 = vector.broadcast %cst_17 : f32 to vector<8x128xf32>
    %24 = arith.maximumf %22, %23 : vector<8x128xf32>
    %25 = arith.truncf %24 : vector<8x128xf32> to vector<8x128xbf16>
    %c0_18 = arith.constant 0 : index
    %c0_19 = arith.constant 0 : index
    %26 = vector.load %arg8[%c0_18, %c0_19] : memref<128x128xbf16, #tpu.memory_space<vmem>>, vector<128x128xbf16>
    %cst_20 = arith.constant dense<0.000000e+00> : vector<8x128xf32>
    %27 = tpu.matmul %25, %26, %cst_20 {dimension_numbers = #tpu.dot_dimension_numbers<[1], [0], [0], [1], [0, 0, 1, 1], [], []>} : vector<8x128xbf16>, vector<128x128xbf16>, vector<8x128xf32> -> vector<8x128xf32>
    %c0_21 = arith.constant 0 : index
    %c0_22 = arith.constant 0 : index
    %28 = vector.load %arg9[%c0_21, %c0_22] : memref<1x128xf32, #tpu.memory_space<vmem>>, vector<1x128xf32>
    %29 = vector.broadcast %28 : vector<1x128xf32> to vector<8x128xf32>
    %30 = arith.addf %27, %29 : vector<8x128xf32>
    %c0_23 = arith.constant 0 : index
    %c0_24 = arith.constant 0 : index
    %31 = vector.load %arg10[%c0_23, %c0_24] : memref<8x128xf32, #tpu.memory_space<vmem>>, vector<8x128xf32>
    tpu.vector_store %arg10[%c0_23, %c0_24], %30 {strides = array<i32>} : memref<8x128xf32, #tpu.memory_space<vmem>>, vector<8x128xf32>,
    return
  }
  func.func @transform_0(%arg0: i32) -> (i32, i32) {
    %c0_i32 = arith.constant 0 : i32
    %c0_i32_0 = arith.constant 0 : i32
    return %arg0, %c0_i32 : i32, i32
  }
  func.func @transform_1(%arg0: i32) -> (i32, i32) {
    %c0_i32 = arith.constant 0 : i32
    %c0_i32_0 = arith.constant 0 : i32
    %c0_i32_1 = arith.constant 0 : i32
    return %c0_i32, %c0_i32_0 : i32, i32
  }
  func.func @transform_2(%arg0: i32) -> (i32, i32) {
    %c0_i32 = arith.constant 0 : i32
    %c0_i32_0 = arith.constant 0 : i32
    %c0_i32_1 = arith.constant 0 : i32
    return %c0_i32, %c0_i32_0 : i32, i32
  }
  func.func @transform_3(%arg0: i32) -> (i32, i32) {
    %c0_i32 = arith.constant 0 : i32
    %c0_i32_0 = arith.constant 0 : i32
    %c0_i32_1 = arith.constant 0 : i32
    return %c0_i32, %c0_i32_0 : i32, i32
  }
  func.func @transform_4(%arg0: i32) -> (i32, i32) {
    %c0_i32 = arith.constant 0 : i32
    %c0_i32_0 = arith.constant 0 : i32
    %c0_i32_1 = arith.constant 0 : i32
    return %c0_i32, %c0_i32_0 : i32, i32
  }
  func.func @transform_5(%arg0: i32) -> (i32, i32) {
    %c0_i32 = arith.constant 0 : i32
    %c0_i32_0 = arith.constant 0 : i32
    %c0_i32_1 = arith.constant 0 : i32
    return %c0_i32, %c0_i32_0 : i32, i32
  }
  func.func @transform_6(%arg0: i32) -> (i32, i32) {
    %c0_i32 = arith.constant 0 : i32
    %c0_i32_0 = arith.constant 0 : i32
    %c0_i32_1 = arith.constant 0 : i32
    return %c0_i32, %c0_i32_0 : i32, i32
  }
  func.func @transform_7(%arg0: i32) -> (i32, i32) {
    %c0_i32 = arith.constant 0 : i32
    %c0_i32_0 = arith.constant 0 : i32
    %c0_i32_1 = arith.constant 0 : i32
    return %c0_i32, %c0_i32_0 : i32, i32
  }
  func.func @transform_8(%arg0: i32) -> (i32, i32) {
    %c0_i32 = arith.constant 0 : i32
    %c0_i32_0 = arith.constant 0 : i32
    %c0_i32_1 = arith.constant 0 : i32
    return %c0_i32, %c0_i32_0 : i32, i32
  }
  func.func @transform_9(%arg0: i32) -> (i32, i32) {
    %c0_i32 = arith.constant 0 : i32
    %c0_i32_0 = arith.constant 0 : i32
    return %arg0, %c0_i32 : i32, i32
  }
}

</mosaic_0001>

<bundles_post_ra>
// kernel: tpu_custom_call.1
= control target key start
LH: loop header
LB: loop body
LE: loop exit
PB: predicated region body
PF: predicated region fallthrough
CT: control target
= control target key end

     0   :  { %14 = vsyncpa [#allocation3], 0  ;;  %s1648_s0 = inlined_call_operand.hbm [shape: f32[8,256], index: 0, kind: input, shape index: {}]   ;;  %s1649_s1 = inlined_call_operand.hbm [shape: bf16[256,384], index: 1, kind: input, shape index: {}]   ;;  %s1650_s2 = inlined_call_operand.vmem [shape: f32[1,384], index: 2, kind: input, shape index: {}]   ;;  %s1651_s3 = inlined_call_operand.hbm [shape: bf16[384,128], index: 3, kind: input, shape index: {}]   ;;  %s1652_s4 = inlined_call_operand.vmem [shape: f32[1,128], index: 4, kind: input, shape index: {}]   ;;  %s1653_s5 = inlined_call_operand.hbm [shape: bf16[128,128], index: 5, kind: input, shape index: {}]   ;;  %s1654_s6 = inlined_call_operand.vmem [shape: f32[1,128], index: 6, kind: input, shape index: {}]   ;;  %s1655_s7 = inlined_call_operand.hbm [shape: bf16[128,128], index: 7, kind: input, shape index: {}]   ;;  %s1656_s8 = inlined_call_operand.vmem [shape: f32[1,128], index: 8, kind: input, shape index: {}]   ;;  %s1657_s9 = inlined_call_operand.hbm [shape: f32[8,128], index: 9, kind: output, shape index: {}]  }
   0x1   :  { %15 = vsyncpa [#allocation6], 0 }
   0x2   :  { %16 = vsyncpa [#allocation9], 0 }
   0x3   :  { %17 = vsyncpa [#allocation4], 0  ;;  %s1517_s30 = smov [#allocation5]  }
   0x4   :  { %s33_s10 = sshll.u32 %s1517_s30, 4  ;;  %s34_s10 = int_to_ptr.vmem [resolvable:$true] %s33_s10 }
   0x5   :  { %s1397_s11 = scalar_lea.vmem %s34_s10, 6144  ;;  %p1402_p1 = scmp.lt.s32.totalorder %s34_s10, %s34_s10 }
   0x6   :  { %p1398_p0 = scmp.ne.s32.totalorder %s34_s10, %s1397_s11  ;;  %p1403_p2 = scmp.lt.s32.totalorder %s1397_s11, %s1397_s11 }
   0x8   :  { %p1404_p3 = por %p1403_p2, %p1402_p1 }
   0xa   :  { %p1405_p4 = pnand %p1404_p3, %p1398_p0 }
   0xc   :  { %1408 = shalt.err (!%p1405_p4)
}
   0xd   :  { %s1518_s12 = smov 192   ;;  %s1519_s13 = smov 12  }
   0xe   :  { %39 = dma.hbm_to_vmem [thread:$0]  %s1649_s1, 6144, %s34_s10, [#allocation6], %s1518_s12, %s1518_s12, %s1519_s13  }
   0xf   :  { %s1520_s16 = smov [#allocation8]   ;;  %s1521_s18 = smov [#allocation2]  }
  0x10   :  { %s61_s17 = sshll.u32 %s1520_s16, 4  ;;  %s24_s19 = sshll.u32 %s1521_s18, 4  ;;  %s62_s17 = int_to_ptr.vmem [resolvable:$true] %s61_s17  ;;  %s25_s19 = int_to_ptr.vmem [resolvable:$true] %s24_s19 }
  0x11   :  { %s1417_s20 = scalar_lea.vmem %s62_s17, 1024  ;;  %p1422_p6 = scmp.lt.s32.totalorder %s62_s17, %s62_s17 }
  0x12   :  { %p1418_p5 = scmp.ne.s32.totalorder %s62_s17, %s1417_s20  ;;  %p1423_p7 = scmp.lt.s32.totalorder %s1417_s20, %s1417_s20 }
  0x14   :  { %p1424_p8 = por %p1423_p7, %p1422_p6 }
  0x16   :  { %p1425_p9 = pnand %p1424_p8, %p1418_p5 }
  0x18   :  { %1428 = shalt.err (!%p1425_p9)
}
  0x19   :  { %s1522_s21 = smov 64   ;;  %s1523_s22 = smov 4  }
  0x1a   :  { %67 = dma.hbm_to_vmem [thread:$0]  %s1653_s5, 1024, %s62_s17, [#allocation9], %s1522_s21, %s1522_s21, %s1523_s22  }
  0x1b   :  { %s1437_s1 = scalar_lea.vmem %s25_s19, 256  ;;  %p1442_p11 = scmp.lt.s32.totalorder %s25_s19, %s25_s19 }
  0x1c   :  { %p1438_p10 = scmp.ne.s32.totalorder %s25_s19, %s1437_s1  ;;  %p1443_p12 = scmp.lt.s32.totalorder %s1437_s1, %s1437_s1 }
  0x1e   :  { %p1444_p13 = por %p1443_p12, %p1442_p11 }
  0x20   :  { %p1445_p0 = pnand %p1444_p13, %p1438_p10 }
  0x22   :  { %1448 = shalt.err (!%p1445_p0)
}
  0x23   :  { %27 = dma.hbm_to_vmem [thread:$0]  %s1648_s0, 256, %s25_s19, [#allocation3]  }
  0x24   :  { %s1524_s27 = smov [#allocation7]   ;;  %s1525_s29 = smov [#allocation10]  }
  0x25   :  { %s47_s28 = sshll.u32 %s1524_s27, 4  ;;  %s75_s30 = sshll.u32 %s1525_s29, 4  ;;  %s48_s28 = int_to_ptr.vmem [resolvable:$true] %s47_s28  ;;  %s76_s30 = int_to_ptr.vmem [resolvable:$true] %s75_s30 }
  0x26   :  { %s1457_s10 = scalar_lea.vmem %s48_s28, 3072  ;;  %p1462_p2 = scmp.lt.s32.totalorder %s48_s28, %s48_s28 }
  0x27   :  { %p1458_p1 = scmp.ne.s32.totalorder %s48_s28, %s1457_s10  ;;  %p1463_p3 = scmp.lt.s32.totalorder %s1457_s10, %s1457_s10 }
  0x29   :  { %p1464_p4 = por %p1463_p3, %p1462_p2 }
  0x2b   :  { %p1465_p5 = pnand %p1464_p4, %p1458_p1 }
  0x2d   :  { %1468 = shalt.err (!%p1465_p5)
}
  0x2e   :  { %53 = dma.hbm_to_vmem [thread:$0]  %s1651_s3, 3072, %s48_s28, [#allocation6], %s1522_s21, %s1522_s21, %s1523_s22  }
  0x2f   :  { %s1477_s0 = scalar_lea.vmem %s76_s30, 1024  ;;  %p1482_p7 = scmp.lt.s32.totalorder %s76_s30, %s76_s30 }
  0x30   :  { %p1478_p6 = scmp.ne.s32.totalorder %s76_s30, %s1477_s0  ;;  %p1483_p8 = scmp.lt.s32.totalorder %s1477_s0, %s1477_s0 }
  0x32   :  { %p1484_p9 = por %p1483_p8, %p1482_p7 }
  0x34   :  { %p1485_p10 = pnand %p1484_p9, %p1478_p6 }
  0x36   :  { %1488 = shalt.err (!%p1485_p10)
}
  0x37   :  { %81 = dma.hbm_to_vmem [thread:$0]  %s1655_s7, 1024, %s76_s30, [#allocation9], %s1522_s21, %s1522_s21, %s1523_s22  }
  0x38   :  { %1509 = dma.done.wait [#allocation3], 256  }
  0x39   :  { %1510 = vsyncadd [#allocation3], 4294967040 }
  0x3a   :  { %1511 = dma.done.wait [#allocation6], 9216  }
  0x3b   :  { %1512 = vsyncadd [#allocation6], 4294958080 }
  0x3c   :  { %1513 = dma.done.wait [#allocation9], 2048  }
  0x3d   :  { %1514 = vsyncadd [#allocation9], 4294965248  ;;  %v1285_v0 = vld [vmem:[#allocation5 + $0xac] ss:$12 sps:$4 sm:$0xff]   ;;  %v1287_v1 = vld [vmem:[#allocation5 + $0xa8] ss:$12 sps:$4 sm:$0xff]  }
  0x3e   :  { %441 = vmatprep.subr.bf16.mxu0 %v1285_v0  ;;  %v1288_v2 = vld [vmem:[#allocation5 + $0x94] ss:$12 sps:$4 sm:$0xff]   ;;  %v1290_v3 = vld [vmem:[#allocation5 + $0x90] ss:$12 sps:$4 sm:$0xff]   ;;  %v1293_v5 = vld [vmem:[#allocation5 + $0x78] ss:$12 sps:$4 sm:$0xff]  }
  0x3f   :  { %442 = vmatpush1.bf16.msra.mxu0 %v1287_v1  ;;  %v1291_v4 = vld [vmem:[#allocation5 + $0x7c] ss:$12 sps:$4 sm:$0xff]   ;;  %v1294_v6 = vld [vmem:[#allocation5 + $0x64] ss:$12 sps:$4 sm:$0xff]   ;;  %v1296_v7 = vld [vmem:[#allocation5 + $0x60] ss:$12 sps:$4 sm:$0xff]  }
  0x40   :  { %443 = vmatprep.subr.bf16.mxu0 %v1288_v2  ;;  %v1297_v8 = vld [vmem:[#allocation5 + $0x4c] ss:$12 sps:$4 sm:$0xff]   ;;  %v1309_v9 = vld [vmem:[#allocation5 + $0x170] ss:$12 sps:$4 sm:$0xff]   ;;  %v1299_v11 = vld [vmem:[#allocation5 + $0x48] ss:$12 sps:$4 sm:$0xff]  }
  0x41   :  { %v1310_v10 = vld [vmem:[#allocation5 + $0xb0] ss:$12 sps:$4 sm:$0xff]   ;;  %1142 = vmatprep.subr.bf16.mxu1 %v1309_v9  ;;  %v1314_v12 = vld [vmem:[#allocation5 + $0x158] ss:$12 sps:$4 sm:$0xff]   ;;  %v1300_v14 = vld [vmem:[#allocation5 + $0x34] ss:$12 sps:$4 sm:$0xff]  }
  0x42   :  { %1143 = vmatpush3.bf16.msra.mxu1 %v1310_v10  ;;  %v1315_v13 = vld [vmem:[#allocation5 + $0x98] ss:$12 sps:$4 sm:$0xff]   ;;  %v1302_v15 = vld [vmem:[#allocation5 + $0x30] ss:$12 sps:$4 sm:$0xff]   ;;  %v1319_v16 = vld [vmem:[#allocation5 + $0x140] ss:$12 sps:$4 sm:$0xff]  }
  0x43   :  { %444 = vmatpush1.bf16.msra.mxu0 %v1290_v3  ;;  %1144 = vmatprep.subr.bf16.mxu1 %v1314_v12  ;;  %v1320_v17 = vld [vmem:[#allocation5 + $0x80] ss:$12 sps:$4 sm:$0xff]   ;;  %v1303_v18 = vld [vmem:[#allocation5 + $0x1c] ss:$12 sps:$4 sm:$0xff]   ;;  %v1305_v21 = vld [vmem:[#allocation5 + $0x18] ss:$12 sps:$4 sm:$0xff]  }
  0x44   :  { %445 = vmatprep.subr.bf16.mxu0 %v1291_v4  ;;  %v1324_v19 = vld [vmem:[#allocation5 + $0x128] ss:$12 sps:$4 sm:$0xff]   ;;  %v1306_v22 = vld [vmem:[#allocation5 + $0x4] ss:$12 sps:$4 sm:$0xff]   ;;  %v1308_v24 = vld [vmem:[#allocation5] ss:$12 sps:$4 sm:$0xff]  }
  0x45   :  { %v1325_v20 = vld [vmem:[#allocation5 + $0x68] ss:$12 sps:$4 sm:$0xff]   ;;  %v1329_v23 = vld [vmem:[#allocation5 + $0x110] ss:$12 sps:$4 sm:$0xff]   ;;  %v1311_v26 = vld [vmem:[#allocation5 + $0x16c] ss:$12 sps:$4 sm:$0xff]  }
  0x46   :  { %1145 = vmatpush3.bf16.msra.mxu1 %v1315_v13  ;;  %v1330_v25 = vld [vmem:[#allocation5 + $0x50] ss:$12 sps:$4 sm:$0xff]   ;;  %v1334_v27 = vld [vmem:[#allocation5 + $0xf8] ss:$12 sps:$4 sm:$0xff]   ;;  %v1313_v28 = vld [vmem:[#allocation5 + $0x168] ss:$12 sps:$4 sm:$0xff]   ;;  %v170_v13 = vlaneseq }
  0x47   :  { %446 = vmatpush1.bf16.msra.mxu0 %v1293_v5  ;;  %1146 = vmatprep.subr.bf16.mxu1 %v1319_v16  ;;  %v1335_v29 = vld [vmem:[#allocation5 + $0x38] ss:$12 sps:$4 sm:$0xff]   ;;  %v1339_v30 = vld [vmem:[#allocation5 + $0xe0] ss:$12 sps:$4 sm:$0xff]   ;;  %v1318_v32 = vld [vmem:[#allocation5 + $0x150] ss:$12 sps:$4 sm:$0xff]  }
  0x48   :  { %447 = vmatprep.subr.bf16.mxu0 %v1294_v6  ;;  %v1316_v31 = vld [vmem:[#allocation5 + $0x154] ss:$12 sps:$4 sm:$0xff]   ;;  %v1321_v35 = vld [vmem:[#allocation5 + $0x13c] ss:$12 sps:$4 sm:$0xff]   ;;  %v1323_v36 = vld [vmem:[#allocation5 + $0x138] ss:$12 sps:$4 sm:$0xff]  }
  0x49   :  { %v1340_v33 = vld [vmem:[#allocation5 + $0x20] ss:$12 sps:$4 sm:$0xff]   ;;  %v1344_v34 = vld [vmem:[#allocation5 + $0xc8] ss:$12 sps:$4 sm:$0xff]   ;;  %v101_v38 = vld [vmem:[#allocation2 + $0x8] sm:$0xff]  ;;  %v1526_v63 = vmov 0.0  }
  0x4a   :  { %1147 = vmatpush3.bf16.msra.mxu1 %v1320_v17  ;;  %v1345_v37 = vld [vmem:[#allocation5 + $0x8] ss:$12 sps:$4 sm:$0xff]   ;;  %v103_v39 = vpack.c.bf16 %v101_v38, %v101_v38  ;;  %v1350_v41 = vld [vmem:[#allocation7 + $0x78] sm:$0xff]   ;;  %v1326_v42 = vld [vmem:[#allocation5 + $0x124] ss:$12 sps:$4 sm:$0xff]   ;;  %vm1527_vm0 = vmmov 0  }
  0x4b   :  { %448 = vmatpush1.bf16.msra.mxu0 %v1296_v7  ;;  %1148 = vmatprep.subr.bf16.mxu1 %v1324_v19  ;;  %v100_v40 = vld [vmem:[#allocation2] sm:$0xff]  ;;  %v1328_v43 = vld [vmem:[#allocation5 + $0x120] ss:$12 sps:$4 sm:$0xff]   ;;  %v1351_v45 = vld [vmem:[#allocation7 + $0x38] sm:$0xff]   ;;  %s1528_s18 = smov [#allocation11]  }
  0x4c   :  { %449 = vmatprep.subr.bf16.mxu0 %v1297_v8  ;;  %514 = vmatprep.mubr.bf16.mxu1 %v103_v39  ;;  %v102_v44 = vpack.c.bf16 %v100_v40, %v100_v40  ;;  %v1353_v46 = vld [vmem:[#allocation7 + $0x70] sm:$0xff]   ;;  %v1331_v47 = vld [vmem:[#allocation5 + $0x10c] ss:$12 sps:$4 sm:$0xff]   ;;  %v1341_v53 = vld [vmem:[#allocation5 + $0xdc] ss:$12 sps:$4 sm:$0xff]   ;;  %s1040_s19 = sshll.u32 %s1528_s18, 4  ;;  %s1041_s19 = int_to_ptr.vmem [resolvable:$true] %s1040_s19 }
  0x4d   :  { %473 = vmatprep.mubr.bf16.mxu0 %v103_v39  ;;  %v1333_v48 = vld [vmem:[#allocation5 + $0x108] ss:$12 sps:$4 sm:$0xff]   ;;  %v1338_v52 = vld [vmem:[#allocation5 + $0xf0] ss:$12 sps:$4 sm:$0xff]   ;;  %v1359_v55 = vld [vmem:[#allocation7 + $0x60] sm:$0xff]   ;;  %p1494_p12 = scmp.lt.s32.totalorder %s1041_s19, %s1041_s19 }
  0x4e   :  { %1149 = vmatpush3.bf16.msra.mxu1 %v1325_v20  ;;  %v1354_v49 = vld [vmem:[#allocation7 + $0x30] sm:$0xff]   ;;  %v1356_v50 = vld [vmem:[#allocation7 + $0x68] sm:$0xff]   ;;  %v1360_v56 = vld [vmem:[#allocation7 + $0x20] sm:$0xff]  }
  0x4f   :  { %450 = vmatpush1.bf16.msra.mxu0 %v1299_v11  ;;  %1150 = vmatprep.subr.bf16.mxu1 %v1329_v23  ;;  %v1336_v51 = vld [vmem:[#allocation5 + $0xf4] ss:$12 sps:$4 sm:$0xff]   ;;  %v1357_v54 = vld [vmem:[#allocation7 + $0x28] sm:$0xff]   ;;  %v1343_v57 = vld [vmem:[#allocation5 + $0xd8] ss:$12 sps:$4 sm:$0xff]  }
  0x50   :  { %451 = vmatprep.subr.bf16.mxu0 %v1300_v14  ;;  %v1362_v58 = vld [vmem:[#allocation7 + $0x58] sm:$0xff]   ;;  %v1346_v59 = vld [vmem:[#allocation5 + $0xc4] ss:$12 sps:$4 sm:$0xff]   ;;  %v1348_v61 = vld [vmem:[#allocation5 + $0xc0] ss:$12 sps:$4 sm:$0xff]   ;;  %v171_v14 = vshrl.u32 %v170_v13, 7 }
  0x51   :  { %v1363_v60 = vld [vmem:[#allocation7 + $0x18] sm:$0xff]   ;;  %v1352_v0 = vld [vmem:[#allocation7 + $0xb0] sm:$0xff]   ;;  %v1355_v1 = vld [vmem:[#allocation7 + $0xa8] sm:$0xff]  }
  0x52   :  { %1151 = vmatpush3.bf16.msra.mxu1 %v1330_v25  ;;  %v1349_v62 = vld [vmem:[#allocation7 + $0xb8] sm:$0xff]   ;;  %v1358_v2 = vld [vmem:[#allocation7 + $0xa0] sm:$0xff]   ;;  %v1364_v4 = vld [vmem:[#allocation7 + $0x90] sm:$0xff]  }
  0x53   :  { %452 = vmatpush1.bf16.msra.mxu0 %v1302_v15  ;;  %1152 = vmatprep.subr.bf16.mxu1 %v1334_v27  ;;  %v1361_v3 = vld [vmem:[#allocation7 + $0x98] sm:$0xff]   ;;  %v1365_v5 = vld [vmem:[#allocation7 + $0x50] sm:$0xff]   ;;  %v1367_v7 = vld [vmem:[#allocation7 + $0x88] sm:$0xff]   ;;  %v180_v15 = vsub.s32 2, %v171_v14  ;;  %v176_v27 = vsub.s32 1, %v171_v14 }
  0x54   :  { %453 = vmatprep.subr.bf16.mxu0 %v1303_v18  ;;  %v1366_v6 = vld [vmem:[#allocation7 + $0x10] sm:$0xff]   ;;  %v1368_v8 = vld [vmem:[#allocation7 + $0x48] sm:$0xff]   ;;  %v1370_v10 = vld [vmem:[#allocation7 + $0x80] sm:$0xff]  }
  0x55   :  { %v1369_v9 = vld [vmem:[#allocation7 + $0x8] sm:$0xff]   ;;  %v1371_v11 = vld [vmem:[#allocation7 + $0x40] sm:$0xff]   ;;  %v168_v16 = vld [vmem:[%s1650_s2] sm:$0x7] }
  0x56   :  { %1153 = vmatpush3.bf16.msra.mxu1 %v1335_v29  ;;  %v1372_v12 = vld [vmem:[#allocation7] sm:$0xff]   ;;  %v181_v18 = vrot.slane %v168_v16, %v180_v15  ;;  %v177_v29 = vrot.slane %v168_v16, %v176_v27  ;;  %v1373_v39 = vld [vmem:[#allocation8 + $0x38] sm:$0xff]   ;;  %v1133_v15 = vld [vmem:[%s1656_s8] ss:$0 sm:$0xff] }
  0x57   :  { %454 = vmatpush1.bf16.msra.mxu0 %v1305_v21  ;;  %1154 = vmatprep.subr.bf16.mxu1 %v1339_v30 }
  0x58   :  { %455 = vmatprep.subr.bf16.mxu0 %v1306_v22 }
  0x5a   :  { %1155 = vmatpush3.bf16.msra.mxu1 %v1340_v33 }
  0x5b   :  { %456 = vmatpush1.bf16.msra.mxu0 %v1308_v24  ;;  %1156 = vmatprep.subr.bf16.mxu1 %v1344_v34 }
  0x5c   :  { %457 = vmatprep.subr.bf16.mxu0 %v1311_v26  ;;  %v172_v26 = vsub.s32 0, %v171_v14 }
  0x5e   :  { %1157 = vmatpush3.bf16.msra.mxu1 %v1345_v37 }
  0x5f   :  { %458 = vmatpush2.bf16.msra.mxu0 %v1313_v28  ;;  %1164 = vmatprep.subr.bf16.mxu1 %v1350_v41  ;;  %v173_v28 = vrot.slane %v168_v16, %v172_v26  ;;  %v1374_v41 = vld [vmem:[#allocation8 + $0x30] sm:$0xff]  }
  0x60   :  { %459 = vmatprep.subr.bf16.mxu0 %v1316_v31 }
  0x61   :  { %515 = vmatmul.mubr.bf16.vlgmr.msra.gmra.mxu1 %v102_v44 }
  0x62   :  { %1165 = vmatpush3.bf16.msra.mxu1 %v1351_v45  ;;  %v1378_v45 = vld [vmem:[#allocation8 + $0x10] sm:$0xff]  }
  0x63   :  { %460 = vmatpush2.bf16.msra.mxu0 %v1318_v32  ;;  %1166 = vmatprep.subr.bf16.mxu1 %v1353_v46  ;;  %v1379_v46 = vld [vmem:[#allocation8 + $0x8] sm:$0xff]  }
  0x64   :  { %461 = vmatprep.subr.bf16.mxu0 %v1321_v35 }
  0x66   :  { %1167 = vmatpush3.bf16.msra.mxu1 %v1354_v49  ;;  %v1382_v49 = vld [vmem:[#allocation10 + $0x30] sm:$0xff]  }
  0x67   :  { %462 = vmatpush2.bf16.msra.mxu0 %v1323_v36  ;;  %1168 = vmatprep.subr.bf16.mxu1 %v1356_v50  ;;  %v1383_v50 = vld [vmem:[#allocation10 + $0x28] sm:$0xff]  }
  0x68   :  { %463 = vmatprep.subr.bf16.mxu0 %v1326_v42  ;;  %v1375_v42 = vld [vmem:[#allocation8 + $0x28] sm:$0xff]  }
  0x6a   :  { %1169 = vmatpush3.bf16.msra.mxu1 %v1357_v54 }
  0x6b   :  { %464 = vmatpush2.bf16.msra.mxu0 %v1328_v43  ;;  %1170 = vmatprep.subr.bf16.mxu1 %v1359_v55  ;;  %v1376_v43 = vld [vmem:[#allocation8 + $0x20] sm:$0xff]  }
  0x6c   :  { %465 = vmatprep.subr.bf16.mxu0 %v1331_v47  ;;  %v1380_v47 = vld [vmem:[#allocation8] sm:$0xff]  }
  0x6e   :  { %1171 = vmatpush3.bf16.msra.mxu1 %v1360_v56 }
  0x6f   :  { %466 = vmatpush2.bf16.msra.mxu0 %v1333_v48  ;;  %1172 = vmatprep.subr.bf16.mxu1 %v1362_v58  ;;  %v1381_v48 = vld [vmem:[#allocation10 + $0x38] sm:$0xff]  }
  0x70   :  { %467 = vmatprep.subr.bf16.mxu0 %v1336_v51  ;;  %v1384_v51 = vld [vmem:[#allocation10 + $0x20] sm:$0xff]  }
  0x72   :  { %1173 = vmatpush3.bf16.msra.mxu1 %v1363_v60 }
  0x73   :  { %468 = vmatpush2.bf16.msra.mxu0 %v1338_v52  ;;  %1174 = vmatprep.subr.bf16.mxu1 %v1365_v5  ;;  %v1385_v52 = vld [vmem:[#allocation10 + $0x18] sm:$0xff]   ;;  %v1387_v5 = vld [vmem:[#allocation10 + $0x8] sm:$0xff]  }
  0x74   :  { %469 = vmatprep.subr.bf16.mxu0 %v1341_v53  ;;  %v1386_v53 = vld [vmem:[#allocation10 + $0x10] sm:$0xff]  }
  0x76   :  { %1175 = vmatpush3.bf16.msra.mxu1 %v1366_v6  ;;  %v1388_v6 = vld [vmem:[#allocation10] sm:$0xff]  }
  0x77   :  { %470 = vmatpush2.bf16.msra.mxu0 %v1343_v57  ;;  %1176 = vmatprep.subr.bf16.mxu1 %v1368_v8 }
  0x78   :  { %471 = vmatprep.subr.bf16.mxu0 %v1346_v59  ;;  %v1099_v59 = vld [vmem:[%s1652_s4] ss:$0 sm:$0xff] }
  0x7a   :  { %1177 = vmatpush3.bf16.msra.mxu1 %v1369_v9 }
  0x7b   :  { %472 = vmatpush2.bf16.msra.mxu0 %v1348_v61  ;;  %1178 = vmatprep.subr.bf16.mxu1 %v1371_v11 }
  0x7c   :  { %1213 = vmatprep.subr.bf16.mxu0 %v1526_v63 }
  0x7e   :  { %474 = vmatmul.mubr.bf16.vlgmr.msra.gmra.mxu0 %v102_v44  ;;  %1179 = vmatpush3.bf16.msra.mxu1 %v1372_v12  ;;  %v1377_v44 = vld [vmem:[#allocation8 + $0x18] sm:$0xff]  }
  0x7f   :  { %1214 = vmatpush3.bf16.msra.mxu0 %v1349_v62  ;;  %1229 = vmatprep.mubr.msk.bf16.mxu0 %vm1527_vm0, %v1526_v63 }
  0x80   :  { %1215 = vmatprep.subr.bf16.mxu0 %v1526_v63  ;;  %1233 = vmatprep.subr.bf16.mxu1 %v1526_v63 }
  0x83   :  { %1216 = vmatpush3.bf16.msra.mxu0 %v1352_v0 }
  0x84   :  { %1217 = vmatprep.subr.bf16.mxu0 %v1526_v63 }
  0x87   :  { %1218 = vmatpush3.bf16.msra.mxu0 %v1355_v1 }
  0x88   :  { %1219 = vmatprep.subr.bf16.mxu0 %v1526_v63 }
  0x8b   :  { %1220 = vmatpush3.bf16.msra.mxu0 %v1358_v2 }
  0x8c   :  { %1221 = vmatprep.subr.bf16.mxu0 %v1526_v63 }
  0x8f   :  { %1222 = vmatpush3.bf16.msra.mxu0 %v1361_v3 }
  0x90   :  { %1223 = vmatprep.subr.bf16.mxu0 %v1526_v63 }
  0x93   :  { %1224 = vmatpush3.bf16.msra.mxu0 %v1364_v4 }
  0x94   :  { %1225 = vmatprep.subr.bf16.mxu0 %v1526_v63 }
  0x97   :  { %1226 = vmatpush3.bf16.msra.mxu0 %v1367_v7  ;;  %v1124_v7 = vld [vmem:[%s1654_s6] ss:$0 sm:$0xff]  ;;  %s1489_s6 = scalar_lea.vmem %s1041_s19, 128 }
  0x98   :  { %1227 = vmatprep.subr.bf16.mxu0 %v1526_v63  ;;  %p1490_p11 = scmp.ne.s32.totalorder %s1041_s19, %s1489_s6  ;;  %p1495_p13 = scmp.lt.s32.totalorder %s1489_s6, %s1489_s6 }
  0x9a   :  { %p1496_p0 = por %p1495_p13, %p1494_p12 }
  0x9b   :  { %1228 = vmatpush3.bf16.msra.mxu0 %v1370_v10 }
  0x9c   :  { %1253 = vmatprep.subr.bf16.mxu0 %v1526_v63  ;;  %p1497_p1 = pnand %p1496_p0, %p1490_p11 }
 0x121   :  { %v1158_v17 = vpop.f32.mrf.mxu1 }
 0x123   :  { %v1159_v19 = vpop.f32.mrf.mxu1 }
 0x124   :  { %v1160_v20 = vadd.f32 %v1159_v19, %v1158_v17 }
 0x125   :  { %v1161_v21 = vpop.f32.mrf.mxu1 }
 0x126   :  { %v517_v22 = vadd.f32 %v1160_v20, %v181_v18 }
 0x127   :  { %v1162_v23 = vpop.f32.mrf.mxu1 }
 0x128   :  { %v524_v24 = vmax.f32 %v517_v22, 0.0 }
 0x12a   :  { %v527_v25 = vpack.c.bf16 %v524_v24, %v524_v24 }
 0x12c   :  { %1230 = vmatmul.mubr.bf16.vlgmr.msra.gmra.mxu0 %v527_v25 }
 0x12d   :  { %1269 = vmatprep.mubr.msk.bf16.mxu0 %vm1527_vm0, %v1526_v63  ;;  %1254 = vmatpush3.bf16.msra.mxu0 %v1381_v48 }
 0x12e   :  { %1255 = vmatprep.subr.bf16.mxu0 %v1526_v63 }
 0x131   :  { %1256 = vmatpush3.bf16.msra.mxu0 %v1382_v49 }
 0x132   :  { %1257 = vmatprep.subr.bf16.mxu0 %v1526_v63 }
 0x135   :  { %1258 = vmatpush3.bf16.msra.mxu0 %v1383_v50 }
 0x136   :  { %1259 = vmatprep.subr.bf16.mxu0 %v1526_v63 }
 0x139   :  { %1260 = vmatpush3.bf16.msra.mxu0 %v1384_v51 }
 0x13a   :  { %1261 = vmatprep.subr.bf16.mxu0 %v1526_v63 }
 0x13d   :  { %1262 = vmatpush3.bf16.msra.mxu0 %v1385_v52 }
 0x13e   :  { %v475_v30 = vpop.f32.mrf.mxu0  ;;  %1263 = vmatprep.subr.bf16.mxu0 %v1526_v63 }
 0x13f   :  { %v476_v31 = vadd.f32 %v475_v30, %v173_v28 }
 0x140   :  { %v477_v32 = vpop.f32.mrf.mxu0 }
 0x141   :  { %v478_v33 = vadd.f32 %v477_v32, %v177_v29  ;;  %v522_v34 = vmax.f32 %v476_v31, 0.0  ;;  %1264 = vmatpush3.bf16.msra.mxu0 %v1386_v53 }
 0x142   :  { %v479_v35 = vpop.f32.mrf.mxu0  ;;  %1265 = vmatprep.subr.bf16.mxu0 %v1526_v63 }
 0x143   :  { %v523_v36 = vmax.f32 %v478_v33, 0.0  ;;  %v525_v40 = vpack.c.bf16 %v522_v34, %v522_v34 }
 0x144   :  { %v480_v37 = vpop.f32.mrf.mxu0 }
 0x145   :  { %v526_v38 = vpack.c.bf16 %v523_v36, %v523_v36  ;;  %1266 = vmatpush3.bf16.msra.mxu0 %v1387_v5 }
 0x146   :  { %1267 = vmatprep.subr.bf16.mxu0 %v1526_v63 }
 0x147   :  { %759 = vmatprep.mubr.bf16.mxu1 %v526_v38 }
 0x148   :  { %760 = vmatmul.mubr.bf16.vlgmr.msra.gmra.mxu1 %v525_v40 }
 0x149   :  { %1234 = vmatpush3.bf16.msra.mxu1 %v1373_v39  ;;  %1249 = vmatprep.mubr.msk.bf16.mxu1 %vm1527_vm0, %v1526_v63 }
 0x14a   :  { %1235 = vmatprep.subr.bf16.mxu1 %v1526_v63  ;;  %1268 = vmatpush3.bf16.msra.mxu0 %v1388_v6 }
 0x14d   :  { %1236 = vmatpush3.bf16.msra.mxu1 %v1374_v41 }
 0x14e   :  { %1237 = vmatprep.subr.bf16.mxu1 %v1526_v63 }
 0x151   :  { %1238 = vmatpush3.bf16.msra.mxu1 %v1375_v42 }
 0x152   :  { %1239 = vmatprep.subr.bf16.mxu1 %v1526_v63 }
 0x155   :  { %1240 = vmatpush3.bf16.msra.mxu1 %v1376_v43 }
 0x156   :  { %1241 = vmatprep.subr.bf16.mxu1 %v1526_v63 }
 0x159   :  { %1242 = vmatpush3.bf16.msra.mxu1 %v1377_v44 }
 0x15a   :  { %1243 = vmatprep.subr.bf16.mxu1 %v1526_v63 }
 0x15d   :  { %1244 = vmatpush3.bf16.msra.mxu1 %v1378_v45 }
 0x15e   :  { %1245 = vmatprep.subr.bf16.mxu1 %v1526_v63 }
 0x161   :  { %1246 = vmatpush3.bf16.msra.mxu1 %v1379_v46 }
 0x162   :  { %1247 = vmatprep.subr.bf16.mxu1 %v1526_v63 }
 0x165   :  { %1248 = vmatpush3.bf16.msra.mxu1 %v1380_v47 }
 0x1ec   :  { %v801_v54 = vpop.f32.mrf.mxu0 }
 0x1ee   :  { %v1231_v55 = vpop.f32.mrf.mxu0 }
 0x1f0   :  { %v804_v56 = vpop.f32.mrf.mxu0 }
 0x1f2   :  { %v1232_v57 = vpop.f32.mrf.mxu0 }
 0x208   :  { %v1180_v58 = vpop.f32.mrf.mxu1 }
 0x20a   :  { %v1181_v60 = vpop.f32.mrf.mxu1 }
 0x20b   :  { %v1182_v61 = vadd.f32 %v1181_v60, %v1180_v58 }
 0x20c   :  { %v1183_v62 = vpop.f32.mrf.mxu1 }
 0x20d   :  { %v762_v0 = vadd.f32 %v1182_v61, %v1099_v59 }
 0x20e   :  { %v1184_v1 = vpop.f32.mrf.mxu1 }
 0x20f   :  { %v802_v2 = vadd.f32 %v801_v54, %v762_v0 }
 0x211   :  { %v807_v3 = vmax.f32 %v802_v2, 0.0 }
 0x213   :  { %v808_v4 = vpack.c.bf16 %v807_v3, %v807_v3 }
 0x215   :  { %1250 = vmatmul.mubr.bf16.vlgmr.msra.gmra.mxu1 %v808_v4 }
 0x2d5   :  { %v914_v8 = vpop.f32.mrf.mxu1 }
 0x2d6   :  { %v915_v9 = vadd.f32 %v1124_v7, %v914_v8 }
 0x2d7   :  { %v1251_v10 = vpop.f32.mrf.mxu1 }
 0x2d8   :  { %v920_v11 = vmax.f32 %v915_v9, 0.0 }
 0x2d9   :  { %v917_v12 = vpop.f32.mrf.mxu1 }
 0x2da   :  { %v921_v13 = vpack.c.bf16 %v920_v11, %v920_v11 }
 0x2db   :  { %v1252_v14 = vpop.f32.mrf.mxu1 }
 0x2dc   :  { %1270 = vmatmul.mubr.bf16.vlgmr.msra.gmra.mxu0 %v921_v13 }
 0x39c   :  { %v1027_v63 = vpop.f32.mrf.mxu0 }
 0x39d   :  { %v1028_v16 = vadd.f32 %v1133_v15, %v1027_v63 }
 0x39e   :  { %v1271_v17 = vpop.f32.mrf.mxu0 }
 0x39f   :  { %1033 = vst [vmem:[#allocation11] sm:$0xff] %v1028_v16 }
 0x3a0   :  { %v1030_v18 = vpop.f32.mrf.mxu0 }
 0x3a1   :  { %1500 = shalt.err (!%p1497_p1)
}
 0x3a2   :  { %1043 = dma.vmem_to_hbm [thread:$0]  %s1041_s19, 128, %s1657_s9, [#allocation4]   ;;  %v1272_v19 = vpop.f32.mrf.mxu0 }
 0x3a3   :  { %1515 = dma.done.wait [#allocation4], 128  }
 0x3a4   :  { %1516 = vsyncadd [#allocation4], 4294967168 }
 0x3a5   :  { %1047 = vsyncpa [#allocation3], 1 }
 0x3a6   :  { %1048 = vsyncpa [#allocation6], 1 }
 0x3a7   :  { %1049 = vsyncpa [#allocation9], 1 }
 0x3a8   :  { %1050 = vsyncpa [#allocation4], 1 }

</bundles_post_ra>
